<compile_context>
chip_gen: v6e
topology: v6e:2x2x1
jax: 0.10.0
libtpu: 0.0.40
codegen_flags: <defaults>
</compile_context>

<pallas_src>
import functools

import jax
import jax.numpy as jnp
from jax.experimental import pallas as pl
from jax.experimental.pallas import tpu as pltpu

BN_EPS = 1e-5


# ---------------------------------------------------------------------------
# Hardware queries (generation-aware budgets).  All guarded with fallbacks.
# ---------------------------------------------------------------------------
def _vmem_capacity_bytes():
    try:
        v = int(pltpu.get_tpu_info().vmem_capacity_bytes)
        if v > 0:
            return v
    except Exception:
        pass
    return 64 << 20  # conservative default (v7x has the smallest VMEM)


def _num_tensorcores():
    try:
        info = pltpu.get_tpu_info()
        for name in ("num_cores", "core_count", "tensorcore_count", "num_tensorcores"):
            v = getattr(info, name, None)
            if isinstance(v, int) and 1 <= v <= 8:
                return int(v)
    except Exception:
        pass
    try:
        kind = jax.devices()[0].device_kind.lower()
        if "v4" in kind or "v7" in kind:  # megacore parts: 2 TensorCores / device
            return 2
    except Exception:
        pass
    return 1


# ---------------------------------------------------------------------------
# Tile sizing / VMEM budgeting.
# ---------------------------------------------------------------------------
def _pick_tile_n(n, c_in, c_out, isz_in, isz_out, budget_bytes, max_tile_n=None):
    """Largest N-tile (multiple of 128, or the full N) whose double-buffered
    input + output tiles fit inside budget_bytes.  Grids use cdiv, so the tile
    never needs to divide N (ragged tails are masked/clipped)."""
    per_col = 2 * (isz_in * c_in + isz_out * c_out)
    max_cols = max(128, budget_bytes // per_col)
    if max_tile_n is not None:
        max_cols = min(max_cols, max_tile_n)
    if n <= max_cols:
        return int(n)                      # single full-width tile (always legal)
    return int(max(128, (max_cols // 128) * 128))


def _vmem_limit_bytes(c_in, c_out, tile_n, isz_in, isz_out, num_cores, ceiling):
    tiles = 2 * tile_n * (c_in * isz_in + c_out * isz_out)      # double-buffered
    consts = (c_out * c_in * isz_in + 4 * c_out * 4
              + 2 * num_cores * (c_in * c_in + c_in) * 4)       # weights + stats
    est = tiles + consts + (4 << 20)
    return int(min(max(est, 16 << 20), ceiling))


# ---------------------------------------------------------------------------
# Pass 1 (streaming path): per-core partial stats of x (column-sum + Gram).
# grid = (num_cores, work_per_core);  work index g = c*work_per_core + i runs
# over the flattened (batch, N-tile) space.
# ---------------------------------------------------------------------------
def _stats_kernel(x_ref, sum_ref, gram_ref, *, n_cols, tile_n, n_tiles,
                  total_work, work_per_core):
    c = pl.program_id(0)
    i = pl.program_id(1)
    g = c * work_per_core + i            # flattened (batch, tile) work index
    t = g % n_tiles                      # N-tile index (for tail masking)

    @pl.when(i == 0)                     # first step of this core's slice
    def _():
        sum_ref[...] = jnp.zeros_like(sum_ref)
        gram_ref[...] = jnp.zeros_like(gram_ref)

    @pl.when(g < total_work)             # skip padding work items
    def _():
        x = x_ref[0]                                             # (C_in, tile_n)
        col = jax.lax.broadcasted_iota(jnp.int32, x.shape, 1)
        valid = (t * tile_n + col) < n_cols                      # ragged tail mask
        xm = jnp.where(valid, x, jnp.zeros_like(x))
        # Gram (MXU, f32 accumulate).
        gram_ref[0] += jax.lax.dot_general(
            xm, xm, (((1,), (1,)), ((), ())), preferred_element_type=jnp.float32)
        # Column-sum folded onto the MXU (ones-column dot) instead of a VALU/XLU
        # cross-lane reduction.
        sum_ref[0] += jnp.dot(xm, jnp.ones((tile_n, 1), xm.dtype),
                              preferred_element_type=jnp.float32)


# ---------------------------------------------------------------------------
# Pass 2 (streaming path): out = relu(W_s @ x + shift), parallel over (B, tiles).
# ---------------------------------------------------------------------------
def _apply_kernel(x_ref, w_ref, shift_ref, o_ref):
    y = jnp.dot(w_ref[...], x_ref[0], preferred_element_type=jnp.float32)
    o_ref[0] = jnp.maximum(y + shift_ref[...], 0.0).astype(o_ref.dtype)


# ---------------------------------------------------------------------------
# Fused single-pass kernel (x resident in VMEM -> x read from HBM exactly once).
# ---------------------------------------------------------------------------
def _fused_kernel(x_ref, w_ref, bias_ref, gamma_ref, beta_ref, o_ref, *, bn_eps):
    B, C_in, N = x_ref.shape
    M = B * N
    # --- stats: Gram + column-sum over all B*N points, all on the MXU ---
    gram = jnp.zeros((C_in, C_in), jnp.float32)
    s = jnp.zeros((C_in, 1), jnp.float32)
    ones = jnp.ones((N, 1), x_ref.dtype)
    for b in range(B):  # static unroll; fused path only triggers for small B*N
        xb = x_ref[b]
        gram = gram + jax.lax.dot_general(
            xb, xb, (((1,), (1,)), ((), ())), preferred_element_type=jnp.float32)
        s = s + jnp.dot(xb, ones, preferred_element_type=jnp.float32)

    # --- fold conv bias + BN(train) into per-channel scale / shift (f32) ---
    w = w_ref[...].astype(jnp.float32)                    # (C_out, C_in)
    bias = bias_ref[...].astype(jnp.float32)              # (C_out, 1)
    gamma = gamma_ref[...].astype(jnp.float32)
    beta = beta_ref[...].astype(jnp.float32)
    ws = jnp.dot(w, s, preferred_element_type=jnp.float32)          # (C_out, 1)
    mean_y = ws / M + bias
    ey2 = (jnp.sum(jnp.dot(w, gram, preferred_element_type=jnp.float32) * w,
                   axis=1, keepdims=True) / M
           + 2.0 * bias * (ws / M) + bias * bias)
    var_y = jnp.maximum(ey2 - mean_y * mean_y, 0.0)       # biased batch variance
    scale = gamma * jax.lax.rsqrt(var_y + bn_eps)         # EUP rsqrt
    shift = bias * scale + beta - mean_y * scale
    w_s = (w * scale).astype(x_ref.dtype)

    # --- apply: out = relu(W_s @ x + shift) ---
    for b in range(B):
        y = jnp.dot(w_s, x_ref[b], preferred_element_type=jnp.float32)
        o_ref[b] = jnp.maximum(y + shift, 0.0).astype(o_ref.dtype)


# ---------------------------------------------------------------------------
# Forward wrapper (matches the torch module's forward semantics).
# ---------------------------------------------------------------------------
def pointconv_forward(x, coords, weight, bias, gamma, beta, *,
                      compute_dtype=jnp.float32, out_dtype=None,
                      force_two_pass=False, max_tile_n=None):
    """x: (B, C_in, N); coords: (B, 3, N) unused (matches torch forward).
    weight: (C_out, C_in) -- torch Conv1d weight (C_out, C_in, 1) squeezed.
    Returns relu(batchnorm1d_train(conv1d_k1(x))), shape (B, C_out, N).

    compute_dtype: dtype for the streamed x copy and matmul operands (f32 exact;
    bf16 halves x read traffic, MXU still accumulates in f32).
    """
    del coords  # unused by the torch forward as well
    B, C_in, N = x.shape
    C_out = weight.shape[0]
    M = B * N
    compute_dtype = jnp.dtype(compute_dtype)
    # TODO(synk): expose out_dtype=bf16 to downstream consumers to halve y writes.
    out_dtype = jnp.dtype(out_dtype) if out_dtype is not None else jnp.dtype(jnp.float32)
    isz_in, isz_out = compute_dtype.itemsize, out_dtype.itemsize

    # f32 master copies for the tiny per-channel glue math.
    w32 = weight.astype(jnp.float32).reshape(C_out, C_in)
    b32 = bias.astype(jnp.float32)
    g32 = gamma.astype(jnp.float32)
    be32 = beta.astype(jnp.float32)

    # x is written to HBM once in compute_dtype and streamed from there.
    xc = x.astype(compute_dtype)

    vmem_cap = _vmem_capacity_bytes()
    vmem_ceiling = vmem_cap * 7 // 8          # ~56 MiB v7x, ~112 MiB v5e/v6e
    tile_budget = vmem_cap * 3 // 8           # ~24 MiB v7x, ~48 MiB v5e/v6e
    fused_threshold = vmem_cap * 5 // 16      # ~20 MiB v7x, ~40 MiB v5e/v6e

    # ---- fused single-pass fast path: x (and the output) fit in VMEM ----
    fused_bytes = (B * C_in * N * isz_in + B * C_out * N * isz_out
                   + C_out * C_in * isz_in + 3 * C_out * 4
                   + (C_in * C_in + C_in) * 4)
    if (not force_two_pass) and fused_bytes <= fused_threshold:
        vmem_limit = int(min(max(2 * fused_bytes + (8 << 20), 16 << 20), vmem_ceiling))
        return pl.pallas_call(
            functools.partial(_fused_kernel, bn_eps=BN_EPS),
            out_shape=jax.ShapeDtypeStruct((B, C_out, N), out_dtype),
            compiler_params=pltpu.CompilerParams(vmem_limit_bytes=vmem_limit),
        )(xc, w32.astype(compute_dtype), b32[:, None], g32[:, None], be32[:, None])

    # ---- streaming path: two tiled passes over HBM ----
    tile_n = _pick_tile_n(N, C_in, C_out, isz_in, isz_out, tile_budget, max_tile_n)
    n_tiles = pl.cdiv(N, tile_n)
    num_cores = _num_tensorcores()
    total_work = B * n_tiles
    work_per_core = pl.cdiv(total_work, num_cores)
    vmem_limit = _vmem_limit_bytes(C_in, C_out, tile_n, isz_in, isz_out,
                                   num_cores, vmem_ceiling)

    def x_stats_map(c, i):
        g = jnp.minimum(c * work_per_core + i, total_work - 1)  # clamp padding work
        return (g // n_tiles, 0, g % n_tiles)

    # pass 1: per-core partial stats (core axis "parallel" -> both v7x TCs stream).
    sum_parts, gram_parts = pl.pallas_call(
        functools.partial(_stats_kernel, n_cols=N, tile_n=tile_n, n_tiles=n_tiles,
                          total_work=total_work, work_per_core=work_per_core),
        out_shape=(jax.ShapeDtypeStruct((num_cores, C_in, 1), jnp.float32),
                   jax.ShapeDtypeStruct((num_cores, C_in, C_in), jnp.float32)),
        grid=(num_cores, work_per_core),
        in_specs=[pl.BlockSpec((1, C_in, tile_n), x_stats_map)],
        out_specs=(pl.BlockSpec((1, C_in, 1), lambda c, i: (c, 0, 0)),
                   pl.BlockSpec((1, C_in, C_in), lambda c, i: (c, 0, 0))),
        compiler_params=pltpu.CompilerParams(
            dimension_semantics=("parallel", "arbitrary"),
            vmem_limit_bytes=vmem_limit),
    )(xc)

    # ---- host glue (C_out-sized math): exact batch mean / biased var of y ----
    s = jnp.sum(sum_parts, axis=0)[:, 0]                 # (C_in,)
    gram = jnp.sum(gram_parts, axis=0)                   # (C_in, C_in)
    ws = w32 @ s                                         # (C_out,)
    mean_y = ws / M + b32
    ey2 = jnp.sum((w32 @ gram) * w32, axis=1) / M + 2.0 * b32 * (ws / M) + b32 * b32
    var_y = jnp.maximum(ey2 - mean_y * mean_y, 0.0)      # guard tiny cancellation
    scale = g32 * jax.lax.rsqrt(var_y + BN_EPS)
    shift = b32 * scale + be32 - mean_y * scale

    w_scaled = (w32 * scale[:, None]).astype(compute_dtype)   # (C_out, C_in)
    shift_col = shift[:, None].astype(jnp.float32)            # (C_out, 1)

    # pass 2: fused conv + folded-BN + ReLU, fully parallel grid (megacore-shardable).
    out = pl.pallas_call(
        _apply_kernel,
        out_shape=jax.ShapeDtypeStruct((B, C_out, N), out_dtype),
        grid=(B, n_tiles),
        in_specs=[
            pl.BlockSpec((1, C_in, tile_n), lambda b, t: (b, 0, t)),
            pl.BlockSpec((C_out, C_in), lambda b, t: (0, 0)),
            pl.BlockSpec((C_out, 1), lambda b, t: (0, 0)),
        ],
        out_specs=pl.BlockSpec((1, C_out, tile_n), lambda b, t: (b, 0, t)),
        compiler_params=pltpu.CompilerParams(
            dimension_semantics=("parallel", "parallel"),
            vmem_limit_bytes=vmem_limit),
    )(xc, w_scaled, shift_col)
    return out


def reference_forward(x, weight, bias, gamma, beta):
    """Pure-JAX reference matching torch Conv1d(k=1) + BatchNorm1d(train) + ReLU."""
    y = jnp.einsum("bcn,oc->bon", x, weight) + bias[None, :, None]
    mean = jnp.mean(y, axis=(0, 2), keepdims=True)
    var = jnp.mean((y - mean) ** 2, axis=(0, 2), keepdims=True)
    y = (y - mean) / jnp.sqrt(var + BN_EPS)
    y = y * gamma[None, :, None] + beta[None, :, None]
    return jnp.maximum(y, 0.0)


if __name__ == "__main__":
    key = jax.random.PRNGKey(0)
    k_x, k_x2, k_c, k_w, k_b, k_g, k_be = jax.random.split(key, 7)

    B, C_in, C_out, N = 2, 4, 8, 16
    x = jax.random.normal(k_x, (B, C_in, N), dtype=jnp.float32)
    coords = jax.random.normal(k_c, (B, 3, N), dtype=jnp.float32)  # unused by forward

    # Deterministic synthetic parameters (torch Conv1d weight (C_out, C_in, 1) squeezed).
    weight = jax.random.normal(k_w, (C_out, C_in), dtype=jnp.float32) * 0.5
    bias = jax.random.normal(k_b, (C_out,), dtype=jnp.float32) * 0.1
    gamma = 1.0 + 0.1 * jax.random.normal(k_g, (C_out,), dtype=jnp.float32)
    beta = 0.1 * jax.random.normal(k_be, (C_out,), dtype=jnp.float32)

    # 1) fused single-pass fast path (x resident in VMEM), f32, exact to 1e-4.
    out = jax.block_until_ready(pointconv_forward(x, coords, weight, bias, gamma, beta))
    ref = reference_forward(x, weight, bias, gamma, beta)
    assert out.shape == (B, C_out, N), out.shape
    assert jnp.allclose(out, ref, atol=1e-4, rtol=1e-4), float(jnp.max(jnp.abs(out - ref)))

    # 2) streaming two-pass path with ragged tail tiles (cdiv grid + masking) and
    #    per-core partial stats accumulators, f32, exact to 1e-4.
    N2 = 200
    x2 = jax.random.normal(k_x2, (B, C_in, N2), dtype=jnp.float32)
    coords2 = jnp.zeros((B, 3, N2), dtype=jnp.float32)
    out2 = jax.block_until_ready(
        pointconv_forward(x2, coords2, weight, bias, gamma, beta,
                          force_two_pass=True, max_tile_n=128))
    ref2 = reference_forward(x2, weight, bias, gamma, beta)
    assert out2.shape == (B, C_out, N2), out2.shape
    assert jnp.allclose(out2, ref2, atol=1e-4, rtol=1e-4), float(jnp.max(jnp.abs(out2 - ref2)))

    # 3) bf16-compute streaming path (halves x read traffic; MXU accumulates f32).
    out3 = jax.block_until_ready(
        pointconv_forward(x2, coords2, weight, bias, gamma, beta,
                          compute_dtype=jnp.bfloat16, force_two_pass=True,
                          max_tile_n=128))
    ref3 = reference_forward(x2.astype(jnp.bfloat16).astype(jnp.float32),
                             weight, bias, gamma, beta)
    assert out3.shape == (B, C_out, N2), out3.shape
    assert jnp.allclose(out3, ref3, atol=1e-1, rtol=1e-1), float(jnp.max(jnp.abs(out3 - ref3)))

    print("KERNEL_OK")
</pallas_src>

<mosaic_0001>
module attributes {stable_mosaic.version = 11 : i64} {
  func.func @_fused_kernel(%arg0: memref<2x4x16xf32, #tpu.memory_space<vmem>>, %arg1: memref<8x4xf32, #tpu.memory_space<vmem>>, %arg2: memref<8x1xf32, #tpu.memory_space<vmem>>, %arg3: memref<8x1xf32, #tpu.memory_space<vmem>>, %arg4: memref<8x1xf32, #tpu.memory_space<vmem>>, %arg5: memref<2x8x16xf32, #tpu.memory_space<vmem>>) attributes {dimension_semantics = [], scalar_prefetch = 0 : i64, scratch_operands = 0 : i64, tpu.core_type = #tpu.core_type<tc>} {
    %cst = arith.constant 0.000000e+00 : f32
    %0 = vector.broadcast %cst : f32 to vector<4x4xf32>
    %cst_0 = arith.constant 0.000000e+00 : f32
    %1 = vector.broadcast %cst_0 : f32 to vector<4x1xf32>
    %cst_1 = arith.constant 1.000000e+00 : f32
    %2 = vector.broadcast %cst_1 : f32 to vector<16x1xf32>
    %c0 = arith.constant 0 : index
    %c0_2 = arith.constant 0 : index
    %c0_3 = arith.constant 0 : index
    %3 = vector.load %arg0[%c0, %c0_2, %c0_3] : memref<2x4x16xf32, #tpu.memory_space<vmem>>, vector<1x4x16xf32>
    %4 = vector.shape_cast %3 : vector<1x4x16xf32> to vector<4x16xf32>
    %cst_4 = arith.constant dense<0.000000e+00> : vector<4x4xf32>
    %5 = tpu.matmul %4, %4, %cst_4 {dimension_numbers = #tpu.dot_dimension_numbers<[1], [1], [0], [0], [0, 0, 1, 0], [], []>} : vector<4x16xf32>, vector<4x16xf32>, vector<4x4xf32> -> vector<4x4xf32>
    %6 = arith.addf %0, %5 : vector<4x4xf32>
    %cst_5 = arith.constant dense<0.000000e+00> : vector<4x1xf32>
    %7 = tpu.matmul %4, %2, %cst_5 {dimension_numbers = #tpu.dot_dimension_numbers<[1], [0], [0], [1], [0, 0, 1, 1], [], []>} : vector<4x16xf32>, vector<16x1xf32>, vector<4x1xf32> -> vector<4x1xf32>
    %8 = arith.addf %1, %7 : vector<4x1xf32>
    %c1 = arith.constant 1 : index
    %c0_6 = arith.constant 0 : index
    %c0_7 = arith.constant 0 : index
    %9 = vector.load %arg0[%c1, %c0_6, %c0_7] : memref<2x4x16xf32, #tpu.memory_space<vmem>>, vector<1x4x16xf32>
    %10 = vector.shape_cast %9 : vector<1x4x16xf32> to vector<4x16xf32>
    %cst_8 = arith.constant dense<0.000000e+00> : vector<4x4xf32>
    %11 = tpu.matmul %10, %10, %cst_8 {dimension_numbers = #tpu.dot_dimension_numbers<[1], [1], [0], [0], [0, 0, 1, 0], [], []>} : vector<4x16xf32>, vector<4x16xf32>, vector<4x4xf32> -> vector<4x4xf32>
    %12 = arith.addf %6, %11 : vector<4x4xf32>
    %cst_9 = arith.constant dense<0.000000e+00> : vector<4x1xf32>
    %13 = tpu.matmul %10, %2, %cst_9 {dimension_numbers = #tpu.dot_dimension_numbers<[1], [0], [0], [1], [0, 0, 1, 1], [], []>} : vector<4x16xf32>, vector<16x1xf32>, vector<4x1xf32> -> vector<4x1xf32>
    %14 = arith.addf %8, %13 : vector<4x1xf32>
    %c0_10 = arith.constant 0 : index
    %c0_11 = arith.constant 0 : index
    %15 = vector.load %arg1[%c0_10, %c0_11] : memref<8x4xf32, #tpu.memory_space<vmem>>, vector<8x4xf32>
    %c0_12 = arith.constant 0 : index
    %c0_13 = arith.constant 0 : index
    %16 = vector.load %arg2[%c0_12, %c0_13] : memref<8x1xf32, #tpu.memory_space<vmem>>, vector<8x1xf32>
    %c0_14 = arith.constant 0 : index
    %c0_15 = arith.constant 0 : index
    %17 = vector.load %arg3[%c0_14, %c0_15] : memref<8x1xf32, #tpu.memory_space<vmem>>, vector<8x1xf32>
    %c0_16 = arith.constant 0 : index
    %c0_17 = arith.constant 0 : index
    %18 = vector.load %arg4[%c0_16, %c0_17] : memref<8x1xf32, #tpu.memory_space<vmem>>, vector<8x1xf32>
    %cst_18 = arith.constant dense<0.000000e+00> : vector<8x1xf32>
    %19 = tpu.matmul %15, %14, %cst_18 {dimension_numbers = #tpu.dot_dimension_numbers<[1], [0], [0], [1], [0, 0, 1, 1], [], []>} : vector<8x4xf32>, vector<4x1xf32>, vector<8x1xf32> -> vector<8x1xf32>
    %cst_19 = arith.constant 3.200000e+01 : f32
    %20 = vector.broadcast %cst_19 : f32 to vector<8x1xf32>
    %21 = arith.divf %19, %20 : vector<8x1xf32>
    %22 = arith.addf %21, %16 : vector<8x1xf32>
    %cst_20 = arith.constant dense<0.000000e+00> : vector<8x4xf32>
    %23 = tpu.matmul %15, %12, %cst_20 {dimension_numbers = #tpu.dot_dimension_numbers<[1], [0], [0], [1], [0, 0, 1, 1], [], []>} : vector<8x4xf32>, vector<4x4xf32>, vector<8x4xf32> -> vector<8x4xf32>
    %24 = arith.mulf %23, %15 : vector<8x4xf32>
    %cst_21 = arith.constant dense<0.000000e+00> : vector<8xf32>
    %25 = vector.multi_reduction <add>, %24, %cst_21 [1] : vector<8x4xf32> to vector<8xf32>
    %26 = vector.shape_cast %25 : vector<8xf32> to vector<8x1xf32>
    %cst_22 = arith.constant 3.200000e+01 : f32
    %27 = vector.broadcast %cst_22 : f32 to vector<8x1xf32>
    %28 = arith.divf %26, %27 : vector<8x1xf32>
    %cst_23 = arith.constant 2.000000e+00 : f32
    %29 = vector.broadcast %cst_23 : f32 to vector<8x1xf32>
    %30 = arith.mulf %29, %16 : vector<8x1xf32>
    %cst_24 = arith.constant 3.200000e+01 : f32
    %31 = vector.broadcast %cst_24 : f32 to vector<8x1xf32>
    %32 = arith.divf %19, %31 : vector<8x1xf32>
    %33 = arith.mulf %30, %32 : vector<8x1xf32>
    %34 = arith.addf %28, %33 : vector<8x1xf32>
    %35 = arith.mulf %16, %16 : vector<8x1xf32>
    %36 = arith.addf %34, %35 : vector<8x1xf32>
    %37 = arith.mulf %22, %22 : vector<8x1xf32>
    %38 = arith.subf %36, %37 : vector<8x1xf32>
    %cst_25 = arith.constant 0.000000e+00 : f32
    %39 = vector.broadcast %cst_25 : f32 to vector<8x1xf32>
    %40 = arith.maximumf %38, %39 : vector<8x1xf32>
    %cst_26 = arith.constant 9.99999974E-6 : f32
    %41 = vector.broadcast %cst_26 : f32 to vector<8x1xf32>
    %42 = arith.addf %40, %41 : vector<8x1xf32>
    %43 = math.rsqrt %42 : vector<8x1xf32>
    %44 = arith.mulf %17, %43 : vector<8x1xf32>
    %45 = arith.mulf %16, %44 : vector<8x1xf32>
    %46 = arith.addf %45, %18 : vector<8x1xf32>
    %47 = arith.mulf %22, %44 : vector<8x1xf32>
    %48 = arith.subf %46, %47 : vector<8x1xf32>
    %49 = vector.broadcast %44 : vector<8x1xf32> to vector<8x4xf32>
    %50 = arith.mulf %15, %49 : vector<8x4xf32>
    %c0_27 = arith.constant 0 : index
    %c0_28 = arith.constant 0 : index
    %c0_29 = arith.constant 0 : index
    %51 = vector.load %arg0[%c0_27, %c0_28, %c0_29] : memref<2x4x16xf32, #tpu.memory_space<vmem>>, vector<1x4x16xf32>
    %52 = vector.shape_cast %51 : vector<1x4x16xf32> to vector<4x16xf32>
    %cst_30 = arith.constant dense<0.000000e+00> : vector<8x16xf32>
    %53 = tpu.matmul %50, %52, %cst_30 {dimension_numbers = #tpu.dot_dimension_numbers<[1], [0], [0], [1], [0, 0, 1, 1], [], []>} : vector<8x4xf32>, vector<4x16xf32>, vector<8x16xf32> -> vector<8x16xf32>
    %54 = vector.broadcast %48 : vector<8x1xf32> to vector<8x16xf32>
    %55 = arith.addf %53, %54 : vector<8x16xf32>
    %cst_31 = arith.constant 0.000000e+00 : f32
    %56 = vector.broadcast %cst_31 : f32 to vector<8x16xf32>
    %57 = arith.maximumf %55, %56 : vector<8x16xf32>
    %c0_32 = arith.constant 0 : index
    %c0_33 = arith.constant 0 : index
    %c0_34 = arith.constant 0 : index
    %58 = vector.load %arg5[%c0_32, %c0_33, %c0_34] : memref<2x8x16xf32, #tpu.memory_space<vmem>>, vector<1x8x16xf32>
    %59 = vector.shape_cast %58 : vector<1x8x16xf32> to vector<8x16xf32>
    %60 = vector.shape_cast %57 : vector<8x16xf32> to vector<1x8x16xf32>
    tpu.vector_store %arg5[%c0_32, %c0_33, %c0_34], %60 {strides = array<i32>} : memref<2x8x16xf32, #tpu.memory_space<vmem>>, vector<1x8x16xf32>,
    %c1_35 = arith.constant 1 : index
    %c0_36 = arith.constant 0 : index
    %c0_37 = arith.constant 0 : index
    %61 = vector.load %arg0[%c1_35, %c0_36, %c0_37] : memref<2x4x16xf32, #tpu.memory_space<vmem>>, vector<1x4x16xf32>
    %62 = vector.shape_cast %61 : vector<1x4x16xf32> to vector<4x16xf32>
    %cst_38 = arith.constant dense<0.000000e+00> : vector<8x16xf32>
    %63 = tpu.matmul %50, %62, %cst_38 {dimension_numbers = #tpu.dot_dimension_numbers<[1], [0], [0], [1], [0, 0, 1, 1], [], []>} : vector<8x4xf32>, vector<4x16xf32>, vector<8x16xf32> -> vector<8x16xf32>
    %64 = vector.broadcast %48 : vector<8x1xf32> to vector<8x16xf32>
    %65 = arith.addf %63, %64 : vector<8x16xf32>
    %cst_39 = arith.constant 0.000000e+00 : f32
    %66 = vector.broadcast %cst_39 : f32 to vector<8x16xf32>
    %67 = arith.maximumf %65, %66 : vector<8x16xf32>
    %c1_40 = arith.constant 1 : index
    %c0_41 = arith.constant 0 : index
    %c0_42 = arith.constant 0 : index
    %68 = vector.load %arg5[%c1_40, %c0_41, %c0_42] : memref<2x8x16xf32, #tpu.memory_space<vmem>>, vector<1x8x16xf32>
    %69 = vector.shape_cast %68 : vector<1x8x16xf32> to vector<8x16xf32>
    %70 = vector.shape_cast %67 : vector<8x16xf32> to vector<1x8x16xf32>
    tpu.vector_store %arg5[%c1_40, %c0_41, %c0_42], %70 {strides = array<i32>} : memref<2x8x16xf32, #tpu.memory_space<vmem>>, vector<1x8x16xf32>,
    return
  }
}

</mosaic_0001>

<bundles_post_ra>
// kernel: tpu_custom_call.1
= control target key start
LH: loop header
LB: loop body
LE: loop exit
PB: predicated region body
PF: predicated region fallthrough
CT: control target
= control target key end

     0   :  { %vm24_vm0 = vcmask 130048   ;;  %v781_v2 = vmov 0.0   ;;  %s867_s0 = inlined_call_operand.vmem [shape: f32[2,4,16], index: 0, kind: input, shape index: {}]   ;;  %s868_s1 = inlined_call_operand.vmem [shape: f32[8,4], index: 1, kind: input, shape index: {}]   ;;  %s869_s2 = inlined_call_operand.vmem [shape: f32[8,1], index: 2, kind: input, shape index: {}]   ;;  %s870_s3 = inlined_call_operand.vmem [shape: f32[8,1], index: 3, kind: input, shape index: {}]   ;;  %s871_s4 = inlined_call_operand.vmem [shape: f32[8,1], index: 4, kind: input, shape index: {}]   ;;  %s872_s5 = inlined_call_operand.hbm [shape: f32[2,8,16], index: 5, kind: output, shape index: {}]  }
   0x1   :  { %v670_v0 = vld [vmem:[%s867_s0 + $0x4] sm:$0xf]  ;;  %v21_v1 = vld [vmem:[%s867_s0] sm:$0xf]  ;;  %704 = vmatprep.subr.mxu0 %v781_v2  ;;  %709 = vmatprep.subr.mxu1 %v781_v2 }
   0x2   :  { %10 = vsyncpa [#allocation3], 0  ;;  %705 = vmatpush3.xpose.msk.msra.mxu0 %vm24_vm0, %v670_v0  ;;  %710 = vmatpush3.xpose.msk.msra.mxu1 %vm24_vm0, %v21_v1  ;;  %vm782_vm1 = vmmov 0   ;;  %v783_v3 = vmov 1.0   ;;  %vm319_vm2 = vcmask 1043456   ;;  %v311_v7 = vld [vmem:[%s868_s1] sm:$0xff] }
   0x3   :  { %706 = vmatprep.mubr.msk.f32.mxu0 %vm782_vm1, %v781_v2  ;;  %711 = vmatprep.mubr.msk.f32.mxu1 %vm782_vm1, %v781_v2  ;;  %vm315_vm3 = vcmask 31744   ;;  %v784_v21 = vmov 0   ;;  %v312_v22 = vld [vmem:[%s869_s2] sm:$0xff] }
   0x4   :  { %714 = vmatprep.subr.mxu0 %v781_v2  ;;  %721 = vmatprep.subr.mxu1 %v781_v2  ;;  %v474_v24 = vmul.f32 2.0, %v312_v22  ;;  %v477_v28 = vmul.f32 %v312_v22, %v312_v22  ;;  %v313_v36 = vld [vmem:[%s870_s3] sm:$0xff] }
   0x5   :  { %707 = vmatmul.mubr.msk.f32.vlgmr.msra.gmra.mxu0 %vm24_vm0, %v670_v0  ;;  %712 = vmatmul.mubr.msk.f32.vlgmr.msra.gmra.mxu1 %vm24_vm0, %v21_v1  ;;  %v683_v37 = vld [vmem:[%s867_s0 + $0x4] sm:$0xf]  ;;  %s785_s0 = smov [#allocation2]  }
   0x6   :  { %715 = vmatpush3.msra.mxu0 %v783_v3  ;;  %722 = vmatpush3.msra.mxu1 %v783_v3  ;;  %v314_v40 = vld [vmem:[%s871_s4] sm:$0xff]  ;;  %s659_s3 = sshll.u32 %s785_s0, 4  ;;  %s660_s3 = int_to_ptr.vmem [resolvable:$true] %s659_s3 }
   0x7   :  { %716 = vmatprep.subr.mxu0 %v781_v2  ;;  %723 = vmatprep.subr.mxu1 %v781_v2  ;;  %s759_s4 = scalar_lea.vmem %s660_s3, 256  ;;  %p764_p1 = scmp.lt.s32.totalorder %s660_s3, %s660_s3 }
   0x8   :  { %717 = vmatpush3.msra.mxu0 %v783_v3  ;;  %718 = vmatprep.mubr.msk.f32.mxu0 %vm782_vm1, %v781_v2  ;;  %p760_p0 = scmp.ne.s32.totalorder %s660_s3, %s759_s4  ;;  %p765_p2 = scmp.lt.s32.totalorder %s759_s4, %s759_s4 }
   0x9   :  { %724 = vmatpush3.msra.mxu1 %v783_v3  ;;  %725 = vmatprep.mubr.msk.f32.mxu1 %vm782_vm1, %v781_v2 }
   0xa   :  { %719 = vmatmul.mubr.msk.f32.vlgmr.msra.gmra.mxu0 %vm24_vm0, %v670_v0  ;;  %726 = vmatmul.mubr.msk.f32.vlgmr.msra.gmra.mxu1 %vm24_vm0, %v21_v1  ;;  %p766_p3 = por %p765_p2, %p764_p1 }
   0xb   :  { %733 = vmatprep.subr.mxu1 %v781_v2  ;;  %735 = vmatprep.mubr.msk.f32.mxu1 %vm782_vm1, %v781_v2 }
   0xc   :  { %728 = vmatprep.subr.mxu0 %v781_v2  ;;  %730 = vmatprep.mubr.msk.f32.mxu0 %vm782_vm1, %v781_v2  ;;  %p767_p4 = pnand %p766_p3, %p760_p0 }
   0xd   :  { %755 = vset.pattern.permute.xlu0 %v784_v21  ;;  %756 = vset.pattern.permute.xlu1 %v784_v21 }
  0xc5   :  { %v94_v4 = vpop.f32.mrf.mxu0  ;;  %v167_v5 = vpop.f32.mrf.mxu1 }
  0xc6   :  { %v168_v6 = vadd.f32 %v167_v5, %v94_v4 }
  0xc7   :  { %v708_v8 = vpop.f32.mrf.mxu0  ;;  %v713_v9 = vpop.f32.mrf.mxu1 }
  0xc8   :  { %734 = vmatpush3.msk.msra.mxu1 %vm319_vm2, %v168_v6 }
  0xc9   :  { %736 = vmatmul.mubr.msk.f32.vlgmr.msra.gmra.mxu1 %vm315_vm3, %v311_v7  ;;  %743 = vmatprep.subr.mxu1 %v781_v2 }
  0xca   :  { %v237_v10 = vpop.f32.mrf.mxu0  ;;  %v307_v11 = vpop.f32.mrf.mxu1  ;;  %745 = vmatprep.mubr.msk.f32.mxu1 %vm782_vm1, %v781_v2  ;;  %744 = vmatpush3.msk.msra.mxu1 %vm319_vm2, %v683_v37 }
  0xcb   :  { %v308_v12 = vadd.f32 %v307_v11, %v237_v10 }
  0xcc   :  { %v720_v13 = vpop.f32.mrf.mxu0  ;;  %v727_v14 = vpop.f32.mrf.mxu1 }
  0xcd   :  { %729 = vmatpush3.msk.msra.mxu0 %vm319_vm2, %v308_v12 }
  0xce   :  { %731 = vmatmul.mubr.msk.f32.vlgmr.msra.gmra.mxu0 %vm315_vm3, %v311_v7  ;;  %738 = vmatprep.subr.mxu0 %v781_v2 }
  0xcf   :  { %739 = vmatpush3.msk.msra.mxu0 %vm319_vm2, %v21_v1  ;;  %740 = vmatprep.mubr.msk.f32.mxu0 %vm782_vm1, %v781_v2 }
 0x189   :  { %v465_v15 = vpop.f32.mrf.mxu1 }
 0x18a   :  { %v469_v16 = vmul.f32 %v465_v15, %v311_v7 }
 0x18b   :  { %v737_v17 = vpop.f32.mrf.mxu1 }
 0x18c   :  { %v470_v18 = vsel %vm315_vm3, %v469_v16, 0.0 }
 0x18d   :  { %471 = vadd.xlane.f32.xlu0 %v470_v18 }
 0x18e   :  { %v389_v19 = vpop.f32.mrf.mxu0 }
 0x18f   :  { %v394_v23 = vmul.f32 0.03125, %v389_v19 }
 0x190   :  { %v732_v20 = vpop.f32.mrf.mxu0 }
 0x191   :  { %v475_v25 = vmul.f32 %v474_v24, %v394_v23  ;;  %v395_v27 = vadd.f32 %v394_v23, %v312_v22 }
 0x193   :  { %v479_v31 = vmul.f32 %v395_v27, %v395_v27 }
 0x216   :  { %v472_v26 = vpop.xlane.xlu0 %471 }
 0x217   :  { %v473_v29 = vmul.f32 0.03125, %v472_v26 }
 0x219   :  { %v476_v30 = vadd.f32 %v475_v25, %v473_v29 }
 0x21b   :  { %v478_v32 = vadd.f32 %v477_v28, %v476_v30 }
 0x21d   :  { %v480_v33 = vsub.f32 %v478_v32, %v479_v31 }
 0x21f   :  { %v481_v34 = vmax.f32 %v480_v33, 0.0 }
 0x221   :  { %v482_v35 = vadd.f32 1e-05, %v481_v34 }
 0x223   :  { %757 = vrsqrt.f32 %v482_v35 }
 0x230   :  { %v758_v38 = vpop.eup %757 }
 0x231   :  { %v484_v39 = vmul.f32 %v758_v38, %v313_v36 }
 0x233   :  { %491 = vperm.xlu0 %755, %v484_v39   ;;  %v485_v41 = vmul.f32 %v484_v39, %v312_v22  ;;  %v487_v43 = vmul.f32 %v484_v39, %v395_v27 }
 0x235   :  { %v486_v42 = vadd.f32 %v485_v41, %v314_v40 }
 0x237   :  { %v488_v44 = vsub.f32 %v486_v42, %v487_v43 }
 0x239   :  { %497 = vperm.xlu1 %756, %v488_v44  }
 0x2ae   :  { %v492_v45 = vpop.permute.xlu0 %491 }
 0x2af   :  { %v494_v46 = vmul.f32 %v492_v45, %v311_v7 }
 0x2b1   :  { %741 = vmatmul.mubr.msk.f32.vlgmr.msra.gmra.mxu0 %vm315_vm3, %v494_v46  ;;  %746 = vmatmul.mubr.msk.f32.vlgmr.msra.gmra.mxu1 %vm315_vm3, %v494_v46 }
 0x2b4   :  { %v498_v47 = vpop.permute.xlu1 %497 }
 0x371   :  { %v571_v48 = vpop.f32.mrf.mxu0  ;;  %v647_v49 = vpop.f32.mrf.mxu1 }
 0x372   :  { %v572_v50 = vadd.f32 %v571_v48, %v498_v47  ;;  %v648_v51 = vadd.f32 %v647_v49, %v498_v47 }
 0x373   :  { %v742_v52 = vpop.f32.mrf.mxu0  ;;  %v747_v53 = vpop.f32.mrf.mxu1 }
 0x374   :  { %v575_v54 = vmax.f32 %v572_v50, 0.0  ;;  %v651_v55 = vmax.f32 %v648_v51, 0.0 }
 0x376   :  { %576 = vst.msk [vmem:[#allocation2] sm:$0xff] %vm24_vm0, %v575_v54  ;;  %653 = vst.msk [vmem:[#allocation2 + $0x8] sm:$0xff] %vm24_vm0, %v651_v55 }
 0x377   :  { %770 = shalt.err (!%p767_p4)
}
 0x378   :  { %s786_s30 = smov 128   ;;  %s787_s6 = smov 8  }
 0x379   :  { %665 = dma.vmem_to_hbm [thread:$0]  %s660_s3, 256, %s872_s5, [#allocation3], %s786_s30, %s786_s30, %s787_s6  }
 0x37a   :  { %779 = dma.done.wait [#allocation3], 256  }
 0x37b   :  { %780 = vsyncadd [#allocation3], 4294967040 }
 0x37c   :  { %669 = vsyncpa [#allocation3], 1 }

</bundles_post_ra>
